<compile_context>
chip_gen: v5e
topology: v5e:2x2
jax: 0.10.0
libtpu: 0.0.40
codegen_flags: <defaults>
</compile_context>

<pallas_src>
import jax
import jax.numpy as jnp
from jax.experimental import pallas as pl
from jax.experimental.pallas import tpu as pltpu


def se_block_kernel(x_ref, w1t_ref, b1_ref, w2t_ref, b2_ref, o_ref):
    # x_ref / o_ref views: (nb, C, HW)  (leading grid dim squeezed out).
    x = x_ref[...]

    # Squeeze: per-channel spatial mean, accumulated in f32 (lane reduce).
    m = jnp.mean(x.astype(jnp.float32), axis=-1)                      # (nb, C)

    # Excitation: both 1x1-conv FCs batched across the nb images.  These are
    # tiny matmuls; HIGHEST keeps them in full f32 (negligible cost here).
    z = jnp.dot(m, w1t_ref[...],
                preferred_element_type=jnp.float32,
                precision=jax.lax.Precision.HIGHEST) + b1_ref[...]    # (nb, Cr)
    z = jnp.maximum(z, 0.0)
    s = jnp.dot(z, w2t_ref[...],
                preferred_element_type=jnp.float32,
                precision=jax.lax.Precision.HIGHEST) + b2_ref[...]    # (nb, C)
    s = jax.nn.sigmoid(s)

    # Scale: VPU broadcast multiply in the boundary dtype (no f32 slab copy).
    o_ref[...] = x * s.astype(x.dtype)[:, :, None]


def _choose_nb(n, item_bytes, max_block_bytes):
    """Largest batch slab whose (nb, C, HW) block fits the streaming budget."""
    cap = max(1, max_block_bytes // item_bytes)
    nb = min(n, cap)
    if nb >= 8:
        nb -= nb % 8                       # sublane-friendly batch dim
    # Prefer >= 2 grid steps (v7x megacore sharding via "parallel") when the
    # split still leaves comfortably large blocks; otherwise keep one step
    # (single-TC v5e/v6e: fewer steps = less per-step overhead).
    if nb == n and n % 2 == 0 and (n // 2) * item_bytes >= (512 << 10):
        nb = n // 2
    return max(nb, 1)


def se_block(x_nchw, w1, b1, w2, b2, *, max_block_bytes=4 << 20):
    """x_nchw: (N, C, H, W). w1: (Cr, C), b1: (Cr,), w2: (C, Cr), b2: (C,)."""
    N, C, H, W = x_nchw.shape
    Cr = w1.shape[0]
    HW = H * W

    item_bytes = C * HW * x_nchw.dtype.itemsize
    nb = _choose_nb(N, item_bytes, max_block_bytes)
    G = pl.cdiv(N, nb)
    Np = G * nb

    # Free reshape only (no transposes).  Pad the batch (zeros) so every grid
    # step gets a full (nb, C, HW) block; padded rows are sliced off below.
    x3 = x_nchw.reshape(N, C, HW)
    if Np != N:
        x3 = jnp.pad(x3, ((0, Np - N), (0, 0), (0, 0)))
    x4 = x3.reshape(G, nb, C, HW)

    w1t = jnp.transpose(w1).astype(jnp.float32)          # (C, Cr)
    w2t = jnp.transpose(w2).astype(jnp.float32)          # (Cr, C)
    b1r = b1.reshape(1, Cr).astype(jnp.float32)
    b2r = b2.reshape(1, C).astype(jnp.float32)

    out = pl.pallas_call(
        se_block_kernel,
        out_shape=jax.ShapeDtypeStruct((G, nb, C, HW), x_nchw.dtype),
        grid_spec=pltpu.PrefetchScalarGridSpec(
            num_scalar_prefetch=0,
            grid=(G,),
            in_specs=[
                pl.BlockSpec((pl.Squeezed(), nb, C, HW),
                             lambda g: (g, 0, 0, 0)),                 # x block
                pl.BlockSpec((C, Cr), lambda g: (0, 0)),              # W1^T
                pl.BlockSpec((1, Cr), lambda g: (0, 0)),              # b1
                pl.BlockSpec((Cr, C), lambda g: (0, 0)),              # W2^T
                pl.BlockSpec((1, C), lambda g: (0, 0)),               # b2
            ],
            out_specs=pl.BlockSpec((pl.Squeezed(), nb, C, HW),
                                   lambda g: (g, 0, 0, 0)),
        ),
        compiler_params=pltpu.CompilerParams(
            dimension_semantics=("parallel",),
            # Double-buffered in+out blocks (<= 4 * 4 MiB) + tiny weights stay
            # well under this on v5e/v6e (128 MiB phys) and v7x (64 MiB phys).
            vmem_limit_bytes=32 * 1024 * 1024,
        ),
    )(x4, w1t, b1r, w2t, b2r)

    out = out.reshape(Np, C, HW)[:N]
    return out.reshape(N, C, H, W)


def se_block_ref(x, w1, b1, w2, b2):
    """Pure-JAX reference matching the PyTorch SEBlock.forward."""
    hi = jax.lax.Precision.HIGHEST
    m = jnp.mean(x, axis=(2, 3))                                          # (N, C)
    z = jax.nn.relu(jnp.einsum('rc,nc->nr', w1, m, precision=hi) + b1[None])
    s = jax.nn.sigmoid(jnp.einsum('cr,nr->nc', w2, z, precision=hi) + b2[None])
    return x * s[:, :, None, None]


if __name__ == "__main__":
    # Shapes consistent with SEBlock(in_channels=32, reduction=16).
    N, C, H, W = 2, 32, 8, 8
    reduction = 16
    Cr = C // reduction

    key = jax.random.PRNGKey(0)
    kx, k1, k2, k3, k4 = jax.random.split(key, 5)

    x = jax.random.normal(kx, (N, C, H, W), dtype=jnp.float32)
    # Deterministic synthetic parameters (1x1 conv weights flattened to 2D).
    w1 = jax.random.normal(k1, (Cr, C), dtype=jnp.float32) * 0.1
    b1 = jax.random.normal(k2, (Cr,), dtype=jnp.float32) * 0.1
    w2 = jax.random.normal(k3, (C, Cr), dtype=jnp.float32) * 0.1
    b2 = jax.random.normal(k4, (C,), dtype=jnp.float32) * 0.1

    out = se_block(x, w1, b1, w2, b2)
    jax.block_until_ready(out)

    ref = se_block_ref(x, w1, b1, w2, b2)
    assert out.shape == (N, C, H, W)
    assert jnp.allclose(out, ref, atol=1e-4, rtol=1e-4), "mismatch vs reference"

    print("KERNEL_OK")
</pallas_src>

<mosaic_0001>
module attributes {stable_mosaic.version = 11 : i64} {
  func.func @se_block_kernel(%arg0: i32, %arg1: memref<1x2x32x64xf32, #tpu.memory_space<vmem>>, %arg2: memref<32x2xf32, #tpu.memory_space<vmem>>, %arg3: memref<1x2xf32, #tpu.memory_space<vmem>>, %arg4: memref<2x32xf32, #tpu.memory_space<vmem>>, %arg5: memref<1x32xf32, #tpu.memory_space<vmem>>, %arg6: memref<1x2x32x64xf32, #tpu.memory_space<vmem>>) attributes {dimension_semantics = [#tpu.dimension_semantics<parallel>], iteration_bounds = array<i64: 1>, scalar_prefetch = 0 : i64, scratch_operands = 0 : i64, tpu.core_type = #tpu.core_type<tc>, window_params = [{transform_indices = @transform_0, window_bounds = array<i64: 1, 2, 32, 64>}, {pipeline_mode = #tpu.pipeline_mode<synchronous>, transform_indices = @transform_1, window_bounds = array<i64: 32, 2>}, {pipeline_mode = #tpu.pipeline_mode<synchronous>, transform_indices = @transform_2, window_bounds = array<i64: 1, 2>}, {pipeline_mode = #tpu.pipeline_mode<synchronous>, transform_indices = @transform_3, window_bounds = array<i64: 2, 32>}, {pipeline_mode = #tpu.pipeline_mode<synchronous>, transform_indices = @transform_4, window_bounds = array<i64: 1, 32>}, {transform_indices = @transform_5, window_bounds = array<i64: 1, 2, 32, 64>}]} {
    %c0 = arith.constant 0 : index
    %c0_0 = arith.constant 0 : index
    %c0_1 = arith.constant 0 : index
    %c0_2 = arith.constant 0 : index
    %0 = vector.load %arg1[%c0, %c0_0, %c0_1, %c0_2] : memref<1x2x32x64xf32, #tpu.memory_space<vmem>>, vector<1x2x32x64xf32>
    %1 = vector.shape_cast %0 : vector<1x2x32x64xf32> to vector<2x32x64xf32>
    %cst = arith.constant dense<0.000000e+00> : vector<2x32xf32>
    %2 = vector.multi_reduction <add>, %1, %cst [2] : vector<2x32x64xf32> to vector<2x32xf32>
    %cst_3 = arith.constant 6.400000e+01 : f32
    %3 = vector.broadcast %cst_3 : f32 to vector<2x32xf32>
    %4 = arith.divf %2, %3 : vector<2x32xf32>
    %c0_4 = arith.constant 0 : index
    %c0_5 = arith.constant 0 : index
    %5 = vector.load %arg2[%c0_4, %c0_5] : memref<32x2xf32, #tpu.memory_space<vmem>>, vector<32x2xf32>
    %cst_6 = arith.constant dense<0.000000e+00> : vector<2x2xf32>
    %6 = tpu.matmul %4, %5, %cst_6 {dimension_numbers = #tpu.dot_dimension_numbers<[1], [0], [0], [1], [0, 0, 1, 1], [], []>, precision = #tpu.contract_precision<fp32>} : vector<2x32xf32>, vector<32x2xf32>, vector<2x2xf32> -> vector<2x2xf32>
    %c0_7 = arith.constant 0 : index
    %c0_8 = arith.constant 0 : index
    %7 = vector.load %arg3[%c0_7, %c0_8] : memref<1x2xf32, #tpu.memory_space<vmem>>, vector<1x2xf32>
    %8 = vector.broadcast %7 : vector<1x2xf32> to vector<2x2xf32>
    %9 = arith.addf %6, %8 : vector<2x2xf32>
    %cst_9 = arith.constant 0.000000e+00 : f32
    %10 = vector.broadcast %cst_9 : f32 to vector<2x2xf32>
    %11 = arith.maximumf %9, %10 : vector<2x2xf32>
    %c0_10 = arith.constant 0 : index
    %c0_11 = arith.constant 0 : index
    %12 = vector.load %arg4[%c0_10, %c0_11] : memref<2x32xf32, #tpu.memory_space<vmem>>, vector<2x32xf32>
    %cst_12 = arith.constant dense<0.000000e+00> : vector<2x32xf32>
    %13 = tpu.matmul %11, %12, %cst_12 {dimension_numbers = #tpu.dot_dimension_numbers<[1], [0], [0], [1], [0, 0, 1, 1], [], []>, precision = #tpu.contract_precision<fp32>} : vector<2x2xf32>, vector<2x32xf32>, vector<2x32xf32> -> vector<2x32xf32>
    %c0_13 = arith.constant 0 : index
    %c0_14 = arith.constant 0 : index
    %14 = vector.load %arg5[%c0_13, %c0_14] : memref<1x32xf32, #tpu.memory_space<vmem>>, vector<1x32xf32>
    %15 = vector.broadcast %14 : vector<1x32xf32> to vector<2x32xf32>
    %16 = arith.addf %13, %15 : vector<2x32xf32>
    %17 = arith.negf %16 : vector<2x32xf32>
    %18 = math.exp %17 : vector<2x32xf32>
    %cst_15 = arith.constant 1.000000e+00 : f32
    %19 = vector.broadcast %cst_15 : f32 to vector<2x32xf32>
    %20 = arith.addf %19, %18 : vector<2x32xf32>
    %21 = arith.divf %19, %20 : vector<2x32xf32>
    %22 = vector.shape_cast %21 : vector<2x32xf32> to vector<2x32x1xf32>
    %23 = vector.broadcast %22 : vector<2x32x1xf32> to vector<2x32x64xf32>
    %24 = arith.mulf %1, %23 : vector<2x32x64xf32>
    %c0_16 = arith.constant 0 : index
    %c0_17 = arith.constant 0 : index
    %c0_18 = arith.constant 0 : index
    %c0_19 = arith.constant 0 : index
    %25 = vector.load %arg6[%c0_16, %c0_17, %c0_18, %c0_19] : memref<1x2x32x64xf32, #tpu.memory_space<vmem>>, vector<1x2x32x64xf32>
    %26 = vector.shape_cast %25 : vector<1x2x32x64xf32> to vector<2x32x64xf32>
    %27 = vector.shape_cast %24 : vector<2x32x64xf32> to vector<1x2x32x64xf32>
    tpu.vector_store %arg6[%c0_16, %c0_17, %c0_18, %c0_19], %27 {strides = array<i32>} : memref<1x2x32x64xf32, #tpu.memory_space<vmem>>, vector<1x2x32x64xf32>,
    return
  }
  func.func @transform_0(%arg0: i32) -> (i32, i32, i32, i32) {
    %c0_i32 = arith.constant 0 : i32
    %c0_i32_0 = arith.constant 0 : i32
    %c0_i32_1 = arith.constant 0 : i32
    %c0_i32_2 = arith.constant 0 : i32
    return %arg0, %c0_i32, %c0_i32_0, %c0_i32_1 : i32, i32, i32, i32
  }
  func.func @transform_1(%arg0: i32) -> (i32, i32) {
    %c0_i32 = arith.constant 0 : i32
    %c0_i32_0 = arith.constant 0 : i32
    %c0_i32_1 = arith.constant 0 : i32
    return %c0_i32, %c0_i32_0 : i32, i32
  }
  func.func @transform_2(%arg0: i32) -> (i32, i32) {
    %c0_i32 = arith.constant 0 : i32
    %c0_i32_0 = arith.constant 0 : i32
    %c0_i32_1 = arith.constant 0 : i32
    return %c0_i32, %c0_i32_0 : i32, i32
  }
  func.func @transform_3(%arg0: i32) -> (i32, i32) {
    %c0_i32 = arith.constant 0 : i32
    %c0_i32_0 = arith.constant 0 : i32
    %c0_i32_1 = arith.constant 0 : i32
    return %c0_i32, %c0_i32_0 : i32, i32
  }
  func.func @transform_4(%arg0: i32) -> (i32, i32) {
    %c0_i32 = arith.constant 0 : i32
    %c0_i32_0 = arith.constant 0 : i32
    %c0_i32_1 = arith.constant 0 : i32
    return %c0_i32, %c0_i32_0 : i32, i32
  }
  func.func @transform_5(%arg0: i32) -> (i32, i32, i32, i32) {
    %c0_i32 = arith.constant 0 : i32
    %c0_i32_0 = arith.constant 0 : i32
    %c0_i32_1 = arith.constant 0 : i32
    %c0_i32_2 = arith.constant 0 : i32
    return %arg0, %c0_i32, %c0_i32_0, %c0_i32_1 : i32, i32, i32, i32
  }
}

</mosaic_0001>

<bundles_post_ra>
// kernel: tpu_custom_call.1
= control target key start
LH: loop header
LB: loop body
LE: loop exit
PB: predicated region body
PF: predicated region fallthrough
CT: control target
= control target key end

     0   :  { %10 = vsyncpa [#allocation3], 0  ;;  %s770_s0 = inlined_call_operand.hbm [shape: f32[1,2,32,64], index: 0, kind: input, shape index: {}]   ;;  %s771_s1 = inlined_call_operand.vmem [shape: f32[32,2], index: 1, kind: input, shape index: {}]   ;;  %s772_s2 = inlined_call_operand.vmem [shape: f32[1,2], index: 2, kind: input, shape index: {}]   ;;  %s773_s3 = inlined_call_operand.vmem [shape: f32[2,32], index: 3, kind: input, shape index: {}]   ;;  %s774_s4 = inlined_call_operand.vmem [shape: f32[1,32], index: 4, kind: input, shape index: {}]   ;;  %s775_s5 = inlined_call_operand.hbm [shape: f32[1,2,32,64], index: 5, kind: output, shape index: {}]  }
   0x1   :  { %11 = vsyncpa [#allocation4], 0  ;;  %s16_s20 = sshll.u32 %s770_s0, 4  ;;  %s652_s21 = smov [#allocation2]   ;;  %s17_s20 = int_to_ptr.hbm [resolvable:$true] %s16_s20 }
   0x2   :  { %s18_s22 = sshll.u32 %s652_s21, 4  ;;  %s653_s23 = smov 128   ;;  %s19_s22 = int_to_ptr.vmem [resolvable:$true] %s18_s22 }
   0x3   :  { %s654_s24 = smov 8  }
   0x4   :  { %24 = dma.hbm_to_vmem [thread:$0]  %s17_s20, 1024, %s19_s22, [#allocation3], %s653_s23, %s653_s23, %s654_s24  }
   0x5   :  { %648 = dma.done.wait [#allocation3], 1024  }
   0x6   :  { %649 = vsyncadd [#allocation3], 4294966272  ;;  %vm45_vm0 = vcmask 523264   ;;  %v693_v0 = vld [vmem:[#allocation2 + $0x20] sm:$0xff]  ;;  %v697_v2 = vld [vmem:[#allocation2 + $0x10] sm:$0xff]  ;;  %v655_v25 = vmov 64.0   ;;  %v101_v48 = vlaneseq }
   0x7   :  { %v695_v1 = vld [vmem:[#allocation2] sm:$0xff]  ;;  %v58_v3 = vsel %vm45_vm0, %v693_v0, 0.0  ;;  %v52_v5 = vsel %vm45_vm0, %v697_v2, 0.0  ;;  %v705_v6 = vld [vmem:[#allocation2 + $0x28] sm:$0xff]  ;;  %v709_v8 = vld [vmem:[#allocation2 + $0x30] sm:$0xff]  ;;  %594 = vrcp.f32 %v655_v25  ;;  %vm106_vm2 = vcmask 130112  }
   0x8   :  { %v46_v4 = vsel %vm45_vm0, %v695_v1, 0.0  ;;  %59 = vadd.xlane.f32.xlu1 %v58_v3  ;;  %53 = vadd.xlane.f32.xlu2 %v52_v5  ;;  %v707_v7 = vld [vmem:[#allocation2 + $0x8] sm:$0xff]  ;;  %v61_v9 = vsel %vm45_vm0, %v705_v6, 0.0  ;;  %v64_v11 = vsel %vm45_vm0, %v709_v8, 0.0  ;;  %v717_v12 = vld [vmem:[#allocation2 + $0x38] sm:$0xff]  ;;  %v87_v18 = vld [vmem:[%s771_s1 + $0x10] sm:$0xff] }
   0x9   :  { %47 = vadd.xlane.f32.xlu0 %v46_v4  ;;  %v49_v10 = vsel %vm45_vm0, %v707_v7, 0.0  ;;  %v719_v13 = vld [vmem:[#allocation2 + $0x18] sm:$0xff]  ;;  %v67_v14 = vsel %vm45_vm0, %v717_v12, 0.0  ;;  %v142_v20 = vand.u32 4294901760, %v87_v18  ;;  %v86_v21 = vld [vmem:[%s771_s1 + $0x8] sm:$0xff]  ;;  %v85_v26 = vld [vmem:[%s771_s1] sm:$0xff] }
   0xa   :  { %v55_v15 = vsel %vm45_vm0, %v719_v13, 0.0  ;;  %v88_v16 = vld [vmem:[%s771_s1 + $0x18] sm:$0xff]  ;;  %v144_v24 = vand.u32 4294901760, %v86_v21  ;;  %v146_v30 = vand.u32 4294901760, %v85_v26  ;;  %v102_v50 = vand.u32 127, %v101_v48  ;;  %s564_s13 = sshll.u32 %s775_s5, 4  ;;  %s565_s13 = int_to_ptr.hbm [resolvable:$true] %s564_s13 }
   0xb   :  { %v140_v17 = vand.u32 4294901760, %v88_v16  ;;  %v176_v23 = vsub.f32 %v87_v18, %v142_v20  ;;  %vm110_vm3 = vcmask 195712   ;;  %vm114_vm4 = vcmask 261312  }
   0xc   :  { %v182_v29 = vsub.f32 %v86_v21, %v144_v24  ;;  %v188_v34 = vsub.f32 %v85_v26, %v146_v30  ;;  %v104_v54 = vadd.s32 4294967288, %v102_v50  ;;  %v108_v63 = vadd.s32 4294967280, %v102_v50 }
   0xd   :  { %v170_v19 = vsub.f32 %v88_v16, %v140_v17  ;;  %241 = vmatpush.msra.mxu3 %v140_v17  ;;  %141 = vmatpush.msra.mxu0 %v140_v17  ;;  %v177_v28 = vand.u32 4294901760, %v176_v23  ;;  %v595_v38 = vpop.eup %594  ;;  %vm123_vm5 = vcmask 1041409   ;;  %vm125_vm6 = vcmask 261120  }
   0xe   :  { %v183_v33 = vand.u32 4294901760, %v182_v29  ;;  %v189_v37 = vand.u32 4294901760, %v188_v34  ;;  %v71_v42 = vmul.f32 64.0, %v595_v38  ;;  %vm75_vm1 = vweird.f32 %v595_v38 }
   0xf   :  { %v171_v22 = vand.u32 4294901760, %v170_v19  ;;  %212 = vmatpush.msra.mxu2 %v170_v19  ;;  %243 = vmatpush.msra.mxu3 %v142_v20  ;;  %v178_v32 = vsub.f32 %v176_v23, %v177_v28  ;;  %vm323_vm7 = vcmask 1041408   ;;  %vm319_vm8 = vcmask 15360  }
  0x10   :  { %62 = vadd.xlane.f32.xlu1 %v61_v9  ;;  %65 = vadd.xlane.f32.xlu2 %v64_v11  ;;  %v184_v36 = vsub.f32 %v182_v29, %v183_v33  ;;  %v190_v40 = vsub.f32 %v188_v34, %v189_v37  ;;  %v72_v43 = vsub.f32 1.0, %v71_v42  ;;  %v112_v9 = vadd.s32 4294967272, %v102_v50 }
  0x11   :  { %50 = vadd.xlane.f32.xlu0 %v49_v10  ;;  %143 = vmatpush.msra.mxu0 %v142_v20  ;;  %v172_v27 = vsub.f32 %v170_v19, %v171_v22  ;;  %v179_v35 = vand.u32 4294901760, %v178_v32 }
  0x12   :  { %215 = vmatpush.msra.mxu2 %v176_v23  ;;  %245 = vmatpush.msra.mxu3 %v144_v24  ;;  %v185_v39 = vand.u32 4294901760, %v184_v36  ;;  %v191_v41 = vand.u32 4294901760, %v190_v40  ;;  %v73_v44 = vmul.f32 %v595_v38, %v72_v43  ;;  %v592_v40 = vld [vmem:[%s772_s2] ss:$0 sm:$0xff] }
  0x13   :  { %145 = vmatpush.msra.mxu0 %v144_v24  ;;  %v173_v31 = vand.u32 4294901760, %v172_v27 }
  0x14   :  { %218 = vmatpush.msra.mxu2 %v182_v29  ;;  %247 = vmatpush.msra.mxu3 %v146_v30  ;;  %v74_v49 = vadd.f32 %v595_v38, %v73_v44 }
  0x15   :  { %147 = vmatpush.msra.mxu0 %v146_v30  ;;  %174 = vmatpush.msra.mxu1 %v173_v31 }
  0x16   :  { %221 = vmatpush.msra.mxu2 %v188_v34  ;;  %v76_v51 = vsel %vm75_vm1, %v595_v38, %v74_v49 }
  0x17   :  { %270 = vmatpush.msrb.mxu0 %v171_v22  ;;  %180 = vmatpush.msra.mxu1 %v179_v35 }
  0x18   :  { %68 = vadd.xlane.f32.xlu1 %v67_v14 }
  0x19   :  { %56 = vadd.xlane.f32.xlu0 %v55_v15  ;;  %274 = vmatpush.msrb.mxu0 %v177_v28 }
  0x1a   :  { %186 = vmatpush.msra.mxu1 %v185_v39 }
  0x1b   :  { %278 = vmatpush.msrb.mxu0 %v183_v33  ;;  %v314_v33 = vld [vmem:[%s773_s3] sm:$0x3] }
  0x1c   :  { %192 = vmatpush.msra.mxu1 %v191_v41  ;;  %v325_v34 = vsel %vm323_vm7, %v314_v33, 0 }
  0x1d   :  { %282 = vmatpush.msrb.mxu0 %v189_v37  ;;  %v342_v35 = vand.u32 4294901760, %v325_v34 }
  0x1e   :  { %301 = vmatpush.msrb.mxu1 %v140_v17 }
  0x1f   :  { %v369_v36 = vsub.f32 %v325_v34, %v342_v35  ;;  %343 = vmatpush.msrb.mxu2 %v342_v35 }
  0x20   :  { %303 = vmatpush.msrb.mxu1 %v142_v20 }
  0x21   :  { %v370_v37 = vand.u32 4294901760, %v369_v36 }
  0x22   :  { %305 = vmatpush.msrb.mxu1 %v144_v24 }
  0x23   :  { %v371_v38 = vsub.f32 %v369_v36, %v370_v37 }
  0x24   :  { %307 = vmatpush.msrb.mxu1 %v146_v30 }
  0x25   :  { %v372_v39 = vand.u32 4294901760, %v371_v38 }
  0x27   :  { %373 = vmatpush.msrb.mxu3 %v372_v39 }
  0x7b   :  { %v60_v45 = vpop.xlane.xlu1 %59  ;;  %v54_v47 = vpop.xlane.xlu2 %53 }
  0x7c   :  { %v48_v46 = vpop.xlane.xlu0 %47  ;;  %v81_v58 = vmul.f32 %v76_v51, %v60_v45  ;;  %v79_v3 = vmul.f32 %v76_v51, %v54_v47 }
  0x7d   :  { %v77_v59 = vmul.f32 %v76_v51, %v48_v46 }
  0x7e   :  { %v116_v4 = vperm.slane %v81_v58, %v102_v50  ;;  %v109_v19 = vperm.slane %v79_v3, %v108_v63  ;;  %v494_v3 = vshrl.u32 %v101_v48, 7 }
  0x7f   :  { %v103_v5 = vperm.slane %v77_v59, %v102_v50 }
  0x80   :  { %583 = vset.pattern.permute.xlu2 %v494_v3  ;;  %v513_v34 = vadd.s32 24, %v494_v3 }
  0x83   :  { %v63_v52 = vpop.xlane.xlu1 %62  ;;  %v66_v57 = vpop.xlane.xlu2 %65 }
  0x84   :  { %v51_v53 = vpop.xlane.xlu0 %50  ;;  %v82_v55 = vmul.f32 %v76_v51, %v63_v52  ;;  %v83_v60 = vmul.f32 %v76_v51, %v66_v57 }
  0x85   :  { %v78_v56 = vmul.f32 %v76_v51, %v51_v53 }
  0x86   :  { %v117_v61 = vperm.slane %v82_v55, %v104_v54  ;;  %v119_v10 = vperm.slane %v83_v60, %v108_v63 }
  0x87   :  { %v105_v62 = vperm.slane %v78_v56, %v104_v54 }
  0x88   :  { %v118_v15 = vsel %vm106_vm2, %v117_v61, %v116_v4  ;;  %v593_v61 = vld [vmem:[%s774_s4] ss:$0 sm:$0xff]  ;;  %s656_s4 = smov [#allocation5]  }
  0x89   :  { %v107_v16 = vsel %vm106_vm2, %v105_v62, %v103_v5  ;;  %v120_v22 = vsel %vm110_vm3, %v119_v10, %v118_v15  ;;  %v507_v5 = vadd.s32 16, %v494_v3  ;;  %s562_s10 = sshll.u32 %s656_s4, 4  ;;  %s563_s10 = int_to_ptr.vmem [resolvable:$true] %s562_s10 }
  0x8a   :  { %v111_v23 = vsel %vm110_vm3, %v109_v19, %v107_v16 }
  0x8b   :  { %v69_v11 = vpop.xlane.xlu1 %68  ;;  %585 = vset.pattern.permute.xlu1 %v507_v5 }
  0x8c   :  { %v57_v14 = vpop.xlane.xlu0 %56  ;;  %v84_v17 = vmul.f32 %v76_v51, %v69_v11 }
  0x8d   :  { %v80_v18 = vmul.f32 %v76_v51, %v57_v14 }
  0x8e   :  { %v121_v20 = vperm.slane %v84_v17, %v112_v9 }
  0x8f   :  { %v113_v21 = vperm.slane %v80_v18, %v112_v9  ;;  %v501_v9 = vadd.s32 8, %v494_v3 }
  0x90   :  { %v122_v24 = vsel %vm114_vm4, %v121_v20, %v120_v22 }
  0x91   :  { %v115_v25 = vsel %vm114_vm4, %v113_v21, %v111_v23  ;;  %584 = vset.pattern.permute.xlu0 %v501_v9 }
  0x92   :  { %v124_v26 = vsel %vm123_vm5, %v122_v24, %v115_v25 }
  0x93   :  { %v126_v27 = vsel %vm125_vm6, %v124_v26, 0 }
  0x94   :  { %v148_v28 = vand.u32 4294901760, %v126_v27 }
  0x96   :  { %194 = vmatmul.f32.vlgmr.msra.gmra.mxu1 %v148_v28  ;;  %v149_v29 = vsub.f32 %v126_v27, %v148_v28 }
  0x97   :  { %419 = vmatpush.msra.mxu1 %v342_v35 }
  0x98   :  { %224 = vmatmul.f32.vlgmr.msra.gmra.mxu2 %v149_v29  ;;  %v150_v30 = vand.u32 4294901760, %v149_v29 }
  0x99   :  { %445 = vmatpush.msra.mxu2 %v370_v37 }
  0x9a   :  { %251 = vmatmul.f32.vlgmr.msra.gmra.mxu3 %v150_v30  ;;  %v151_v31 = vsub.f32 %v149_v29, %v150_v30 }
  0x9b   :  { %467 = vmatpush.msra.mxu3 %v342_v35 }
  0x9c   :  { %v152_v32 = vand.u32 4294901760, %v151_v31 }
  0x9e   :  { %153 = vmatmul.f32.vlgmr.msra.gmra.mxu0 %v152_v32  ;;  %309 = vmatmul.f32.vlgmr.msrb.gmra.mxu1 %v148_v28 }
  0x9f   :  { %396 = vmatpush.msra.mxu0 %v369_v36 }
  0xa6   :  { %284 = vmatmul.f32.vlgmr.msrb.gmra.mxu0 %v148_v28 }
 0x113   :  { %v195_v41 = vpop.f32.mrf.mxu1 }
 0x11b   :  { %v154_v42 = vpop.f32.mrf.mxu0  ;;  %v225_v45 = vpop.f32.mrf.mxu2 }
 0x11c   :  { %v155_v43 = vadd.f32 %v592_v40, %v154_v42  ;;  %v310_v52 = vpop.f32.mrf.mxu1 }
 0x11d   :  { %v252_v47 = vpop.f32.mrf.mxu3 }
 0x11e   :  { %v196_v44 = vadd.f32 %v195_v41, %v155_v43 }
 0x120   :  { %v226_v46 = vadd.f32 %v225_v45, %v196_v44 }
 0x122   :  { %v253_v49 = vadd.f32 %v252_v47, %v226_v46 }
 0x123   :  { %v285_v50 = vpop.f32.mrf.mxu0 }
 0x124   :  { %v286_v51 = vadd.f32 %v285_v50, %v253_v49 }
 0x126   :  { %v311_v53 = vadd.f32 %v310_v52, %v286_v51 }
 0x128   :  { %v313_v54 = vmax.f32 %v311_v53, 0.0 }
 0x12a   :  { %v321_v55 = vsel %vm319_vm8, %v313_v54, 0 }
 0x12b   :  { %v344_v56 = vand.u32 4294901760, %v321_v55 }
 0x12d   :  { %v345_v57 = vsub.f32 %v321_v55, %v344_v56  ;;  %375 = vmatmul.f32.vlgmr.msrb.gmra.mxu3 %v344_v56 }
 0x12f   :  { %399 = vmatmul.f32.vlgmr.msra.gmra.mxu0 %v345_v57  ;;  %v346_v58 = vand.u32 4294901760, %v345_v57 }
 0x131   :  { %423 = vmatmul.f32.vlgmr.msra.gmra.mxu1 %v346_v58  ;;  %v347_v59 = vsub.f32 %v345_v57, %v346_v58 }
 0x133   :  { %v348_v60 = vand.u32 4294901760, %v347_v59 }
 0x135   :  { %349 = vmatmul.f32.vlgmr.msrb.gmra.mxu2 %v348_v60  ;;  %469 = vmatmul.f32.vlgmr.msra.gmra.mxu3 %v344_v56 }
 0x13d   :  { %447 = vmatmul.f32.vlgmr.msra.gmra.mxu2 %v344_v56 }
 0x1ac   :  { %v400_v11 = vpop.f32.mrf.mxu0 }
 0x1ae   :  { %v424_v15 = vpop.f32.mrf.mxu1 }
 0x1b0   :  { %v376_v62 = vpop.f32.mrf.mxu3 }
 0x1b8   :  { %v350_v63 = vpop.f32.mrf.mxu2  ;;  %v470_v19 = vpop.f32.mrf.mxu3 }
 0x1b9   :  { %v351_v4 = vadd.f32 %v593_v61, %v350_v63 }
 0x1bb   :  { %v377_v10 = vadd.f32 %v376_v62, %v351_v4 }
 0x1bd   :  { %v401_v14 = vadd.f32 %v400_v11, %v377_v10 }
 0x1bf   :  { %v425_v16 = vadd.f32 %v424_v15, %v401_v14 }
 0x1c0   :  { %v448_v17 = vpop.f32.mrf.mxu2 }
 0x1c1   :  { %v449_v18 = vadd.f32 %v448_v17, %v425_v16 }
 0x1c3   :  { %v471_v20 = vadd.f32 %v470_v19, %v449_v18 }
 0x1c5   :  { %v577_v21 = vmul.f32 -1.442695, %v471_v20 }
 0x1c7   :  { %596 = vpow2.f32 %v577_v21 }
 0x1cd   :  { %v597_v22 = vpop.eup %596 }
 0x1ce   :  { %v476_v23 = vadd.f32 1.0, %v597_v22 }
 0x1d0   :  { %598 = vrcp.f32 %v476_v23  ;;  %v488_v26 = vand.u32 2147483648, %v476_v23  ;;  %v486_v28 = vand.u32 2147483647, %v476_v23  ;;  %vm482_vm10 = vweird.f32 %v476_v23 }
 0x1d2   :  { %v489_v30 = vor.u32 1.1754944e-38, %v488_v26  ;;  %vm487_vm12 = vcmp.eq.f32.partialorder %v486_v28, 8.507059e+37 }
 0x1d6   :  { %v599_v48 = vpop.eup %598 }
 0x1d7   :  { %v478_v24 = vmul.f32 %v599_v48, %v476_v23  ;;  %vm483_vm9 = vweird.f32 %v599_v48 }
 0x1d8   :  { %vm484_vm11 = vmor %vm482_vm10, %vm483_vm9 }
 0x1d9   :  { %v479_v25 = vsub.f32 1.0, %v478_v24 }
 0x1db   :  { %v480_v27 = vmul.f32 %v599_v48, %v479_v25 }
 0x1dd   :  { %v481_v29 = vadd.f32 %v599_v48, %v480_v27 }
 0x1df   :  { %v485_v31 = vsel %vm484_vm11, %v599_v48, %v481_v29 }
 0x1e0   :  { %v490_v32 = vsel %vm487_vm12, %v489_v30, %v485_v31 }
 0x1e1   :  { %v492_v33 = vperm.slane %v490_v32, 0  ;;  %v517_v35 = vperm.slane %v490_v32, 1 }
 0x1e3   :  { %509 = vperm.xlu1 %585, %v492_v33   ;;  %503 = vperm.xlu0 %584, %v492_v33  }
 0x1e4   :  { %497 = vperm.xlu2 %583, %v492_v33  }
 0x1eb   :  { %588 = vset.pattern.permute.xlu1 %v501_v9  ;;  %591 = vset.pattern.permute.xlu0 %v513_v34 }
 0x1ec   :  { %586 = vset.pattern.permute.xlu2 %v513_v34 }
 0x1f3   :  { %528 = vperm.xlu1 %588, %v517_v35  }
 0x1f4   :  { %515 = vperm.xlu2 %586, %v492_v33  }
 0x1fb   :  { %590 = vset.pattern.permute.xlu1 %v513_v34 }
 0x1fc   :  { %587 = vset.pattern.permute.xlu2 %v494_v3 }
 0x203   :  { %540 = vperm.xlu1 %590, %v517_v35  }
 0x204   :  { %522 = vperm.xlu2 %587, %v517_v35  }
 0x20c   :  { %589 = vset.pattern.permute.xlu2 %v507_v5 }
 0x214   :  { %534 = vperm.xlu2 %589, %v517_v35  }
 0x23e   :  { %v498_v36 = vpop.permute.xlu2 %497 }
 0x23f   :  { %v542_v37 = vmul.f32 %v498_v36, %v695_v1 }
 0x241   :  { %550 = vst.msk [vmem:[#allocation5] sm:$0xff] %vm45_vm0, %v542_v37 }
 0x24e   :  { %v516_v38 = vpop.permute.xlu2 %515 }
 0x24f   :  { %v545_v39 = vmul.f32 %v516_v38, %v719_v13 }
 0x251   :  { %553 = vst.msk [vmem:[#allocation5 + $0x18] sm:$0xff] %vm45_vm0, %v545_v39 }
 0x255   :  { %v510_v40 = vpop.permute.xlu1 %509  ;;  %v504_v41 = vpop.permute.xlu0 %503 }
 0x256   :  { %v544_v42 = vmul.f32 %v510_v40, %v697_v2  ;;  %v543_v43 = vmul.f32 %v504_v41, %v707_v7 }
 0x258   :  { %552 = vst.msk [vmem:[#allocation5 + $0x10] sm:$0xff] %vm45_vm0, %v544_v42 }
 0x259   :  { %551 = vst.msk [vmem:[#allocation5 + $0x8] sm:$0xff] %vm45_vm0, %v543_v43 }
 0x25e   :  { %v523_v44 = vpop.permute.xlu2 %522 }
 0x25f   :  { %v546_v1 = vmul.f32 %v523_v44, %v693_v0 }
 0x261   :  { %554 = vst.msk [vmem:[#allocation5 + $0x20] sm:$0xff] %vm45_vm0, %v546_v1 }
 0x265   :  { %v529_v45 = vpop.permute.xlu1 %528 }
 0x266   :  { %v547_v13 = vmul.f32 %v529_v45, %v705_v6 }
 0x268   :  { %555 = vst.msk [vmem:[#allocation5 + $0x28] sm:$0xff] %vm45_vm0, %v547_v13 }
 0x26e   :  { %v535_v46 = vpop.permute.xlu2 %534 }
 0x26f   :  { %v548_v47 = vmul.f32 %v535_v46, %v709_v8 }
 0x271   :  { %556 = vst.msk [vmem:[#allocation5 + $0x30] sm:$0xff] %vm45_vm0, %v548_v47 }
 0x275   :  { %v541_v2 = vpop.permute.xlu1 %540 }
 0x276   :  { %v549_v0 = vmul.f32 %v541_v2, %v717_v12 }
 0x278   :  { %557 = vst.msk [vmem:[#allocation5 + $0x38] sm:$0xff] %vm45_vm0, %v549_v0 }
 0x279   :  { %570 = dma.vmem_to_hbm [thread:$0]  %s563_s10, 1024, %s565_s13, [#allocation4], %s653_s23, %s653_s23, %s654_s24  }
 0x27a   :  { %650 = dma.done.wait [#allocation4], 1024  }
 0x27b   :  { %651 = vsyncadd [#allocation4], 4294966272 }
 0x27c   :  { %575 = vsyncpa [#allocation3], 1 }
 0x27d   :  { %576 = vsyncpa [#allocation4], 1 }

</bundles_post_ra>
